<compile_context>
chip_gen: v7x
topology: tpu7x:2x2x1
jax: 0.10.0
libtpu: 0.0.40
codegen_flags: <defaults>
</compile_context>

<pallas_src>
import jax
import jax.numpy as jnp
from jax.experimental import pallas as pl
from jax.experimental.pallas import tpu as pltpu

_MIB = 1024 * 1024


def _round_up(x, m):
    return ((x + m - 1) // m) * m


def _cdiv(a, b):
    return (a + b - 1) // b


def _tpu_info():
    """Returns (vmem_capacity_bytes, num_tensorcores_per_chip).

    Falls back to conservative v7x-like values (64 MiB, 2 cores) if the query
    is unavailable; the fallback only affects tiling choices, never correctness.
    """
    vmem = 64 * _MIB
    info = None
    try:
        info = pltpu.get_tpu_info()
        vmem = int(info.vmem_capacity_bytes)
    except Exception:
        info = None
    num_cores = None
    if info is not None:
        for attr in ("num_cores", "tensorcores_per_chip", "num_tensorcores",
                     "core_count"):
            v = getattr(info, attr, None)
            if isinstance(v, int) and v > 0:
                num_cores = v
                break
    if num_cores is None:
        # Heuristic: 64 MiB per-TC VMEM => v7x (2 TCs/chip); 128 MiB => v5e/v6e (1 TC).
        num_cores = 2 if vmem <= 64 * _MIB else 1
    return vmem, num_cores


def _choose_tile_rows(rows, hidden, itemsize, row_align, vmem_cap, num_cores):
    # VMEM bytes held per tile row per grid step:
    #   input  double-buffer: 2 * hidden * itemsize
    #   output double-buffer: 2 * hidden * itemsize
    #   f32 compute temps Mosaic may materialize (upcast, x*inv*scale):
    #     ~2 * hidden * 4   (the dominant budget risk on v7x's 64 MiB VMEM)
    per_row_bytes = 4 * hidden * itemsize + 2 * hidden * 4

    # Smaller fraction on v7x (64 MiB) to leave headroom for temps/compiler;
    # v5e/v6e have 128 MiB so a larger fraction is safe and shrinks step count.
    frac = 0.40 if vmem_cap <= 64 * _MIB else 0.55
    budget = int(vmem_cap * frac)

    # Bytes-based ceiling: ~16 MiB of *input* per block already sits on the
    # HBM-roofline plateau; more only burns VMEM.
    cap_by_block_bytes = max(row_align, (16 * _MIB) // max(1, hidden * itemsize))

    tile = min(budget // per_row_bytes, cap_by_block_bytes)
    tile = max(row_align, (tile // row_align) * row_align)
    tile = min(tile, _round_up(rows, row_align))

    # Megacore balance (v7x only): make the number of grid steps even (or
    # reasonably large) so both TensorCores stay busy. Single-TC chips keep
    # the biggest tile / fewest steps.
    if num_cores >= 2 and rows > row_align:
        grid = _cdiv(rows, tile)
        if grid < 2:
            grid = 2
        if grid % 2 != 0 and grid < 8:
            grid += 1
        tile = min(tile, max(row_align, _round_up(_cdiv(rows, grid), row_align)))
    return tile


def _rmsnorm_kernel(eps, inv_hidden):
    def kernel(x_ref, scale_ref, o_ref):
        # Compute in f32 regardless of I/O dtype (important on v5e: no bf16 VPU).
        x = x_ref[...].astype(jnp.float32)                 # (tile_rows, hidden)
        ss = jnp.sum(x * x, axis=-1, keepdims=True)        # (tile_rows, 1)
        rms = jnp.sqrt(ss * inv_hidden)                    # fold 1/hidden here
        # One reciprocal per row instead of a per-element divide. approx=False
        # keeps full f32 accuracy; the kernel is DMA-bound so the refined
        # reciprocal costs ~0 wall clock.
        inv = pl.reciprocal(rms + eps, approx=False)       # (tile_rows, 1)
        scale = scale_ref[...].astype(jnp.float32)         # (1, hidden) broadcast
        o_ref[...] = ((x * inv) * scale).astype(o_ref.dtype)
    return kernel


def rmsnorm(x, scale, eps=1e-6):
    """x: (..., hidden), scale: (hidden,). Returns same shape/dtype as x."""
    orig_shape = x.shape
    hidden = int(orig_shape[-1])
    rows = 1
    for d in orig_shape[:-1]:
        rows *= int(d)

    if rows == 0 or hidden == 0:
        # Genuinely empty input: nothing to normalize.
        return x

    itemsize = jnp.dtype(x.dtype).itemsize
    # Sublane packing: f32 rows tile by 8, bf16 by 16, 8-bit by 32.
    row_align = {4: 8, 2: 16, 1: 32}.get(itemsize, 8)

    vmem_cap, num_cores = _tpu_info()
    tile_rows = _choose_tile_rows(rows, hidden, itemsize, row_align,
                                  vmem_cap, num_cores)

    x2d = x.reshape(rows, hidden)
    scale2d = scale.reshape(1, hidden)

    # No padding / slicing copies: let Pallas mask the final partial row-block.
    # Safe because every row is independent and the hidden (reduction) axis
    # block is always full-extent — padded lanes never enter the mean.
    grid = pl.cdiv(rows, tile_rows)

    # Scoped-VMEM limit with headroom: ~51 MiB on v7x's 64 MiB, up to ~110 MiB
    # on 128 MiB v5e/v6e.
    vmem_limit = max(32 * _MIB, min(int(vmem_cap * 0.80), 110 * _MIB))

    # NOTE: for best store throughput `hidden` should be a multiple of 128
    # (lane-dense output). Narrower / non-multiple hidden is still correct but
    # lowers to masked partial stores.
    out = pl.pallas_call(
        _rmsnorm_kernel(float(eps), 1.0 / float(hidden)),
        out_shape=jax.ShapeDtypeStruct((rows, hidden), x.dtype),
        grid_spec=pltpu.PrefetchScalarGridSpec(
            num_scalar_prefetch=0,
            grid=(grid,),
            in_specs=[
                pl.BlockSpec((tile_rows, hidden), lambda i: (i, 0)),
                # Constant block index -> the scale tile stays resident and is
                # not re-DMA'd every grid step.
                pl.BlockSpec((1, hidden), lambda i: (0, 0)),
            ],
            out_specs=pl.BlockSpec((tile_rows, hidden), lambda i: (i, 0)),
        ),
        compiler_params=pltpu.CompilerParams(
            dimension_semantics=("parallel",),
            vmem_limit_bytes=vmem_limit,
        ),
    )(x2d, scale2d)

    return out.reshape(orig_shape)


if __name__ == "__main__":
    key = jax.random.PRNGKey(0)
    kx, ks, kx2, kx3 = jax.random.split(key, 4)

    eps = 1e-6

    def ref_fn(x, scale):
        xf = x.astype(jnp.float32)
        rms = jnp.sqrt(jnp.mean(xf * xf, axis=-1, keepdims=True))
        return scale.astype(jnp.float32) * (xf / (rms + eps))

    batch, seq, hidden = 2, 8, 128
    x = jax.random.normal(kx, (batch, seq, hidden), dtype=jnp.float32)
    # Deterministic parameter init. (PyTorch __init__ uses zeros(dim); a
    # nonzero deterministic init is used so the check is meaningful.)
    scale = jax.random.normal(ks, (hidden,), dtype=jnp.float32)

    # f32, tile-divisible row count.
    out = jax.block_until_ready(rmsnorm(x, scale, eps=eps))
    ref = ref_fn(x, scale)
    assert jnp.allclose(out, ref, atol=1e-5, rtol=1e-5), "f32 mismatch"

    # f32, non-divisible row count (exercises the masked partial tail block).
    x_odd = jax.random.normal(kx2, (3, 5, hidden), dtype=jnp.float32)
    out_odd = jax.block_until_ready(rmsnorm(x_odd, scale, eps=eps))
    ref_odd = ref_fn(x_odd, scale)
    assert jnp.allclose(out_odd, ref_odd, atol=1e-5, rtol=1e-5), "tail mismatch"

    # bf16 I/O (halves HBM traffic; math done in f32 inside the kernel).
    x_bf16 = jax.random.normal(kx3, (batch, seq, hidden),
                               dtype=jnp.float32).astype(jnp.bfloat16)
    scale_bf16 = scale.astype(jnp.bfloat16)
    out_bf16 = jax.block_until_ready(rmsnorm(x_bf16, scale_bf16, eps=eps))
    ref_bf16 = ref_fn(x_bf16, scale_bf16).astype(jnp.bfloat16)
    assert jnp.allclose(out_bf16.astype(jnp.float32),
                        ref_bf16.astype(jnp.float32),
                        atol=2e-2, rtol=2e-2), "bf16 mismatch"

    print("KERNEL_OK")
</pallas_src>

<mosaic_0001>
module attributes {stable_mosaic.version = 11 : i64} {
  func.func @kernel(%arg0: i32, %arg1: memref<8x128xf32, #tpu.memory_space<vmem>>, %arg2: memref<1x128xf32, #tpu.memory_space<vmem>>, %arg3: memref<8x128xf32, #tpu.memory_space<vmem>>) attributes {dimension_semantics = [#tpu.dimension_semantics<parallel>], iteration_bounds = array<i64: 2>, scalar_prefetch = 0 : i64, scratch_operands = 0 : i64, tpu.core_type = #tpu.core_type<tc>, window_params = [{transform_indices = @transform_0, window_bounds = array<i64: 8, 128>}, {pipeline_mode = #tpu.pipeline_mode<synchronous>, transform_indices = @transform_1, window_bounds = array<i64: 1, 128>}, {transform_indices = @transform_2, window_bounds = array<i64: 8, 128>}]} {
    %c0 = arith.constant 0 : index
    %c0_0 = arith.constant 0 : index
    %0 = vector.load %arg1[%c0, %c0_0] : memref<8x128xf32, #tpu.memory_space<vmem>>, vector<8x128xf32>
    %1 = arith.mulf %0, %0 : vector<8x128xf32>
    %cst = arith.constant dense<0.000000e+00> : vector<8xf32>
    %2 = vector.multi_reduction <add>, %1, %cst [1] : vector<8x128xf32> to vector<8xf32>
    %3 = vector.shape_cast %2 : vector<8xf32> to vector<8x1xf32>
    %cst_1 = arith.constant 7.812500e-03 : f32
    %4 = vector.broadcast %cst_1 : f32 to vector<8x1xf32>
    %5 = arith.mulf %3, %4 : vector<8x1xf32>
    %6 = math.sqrt %5 : vector<8x1xf32>
    %cst_2 = arith.constant 9.99999997E-7 : f32
    %7 = vector.broadcast %cst_2 : f32 to vector<8x1xf32>
    %8 = arith.addf %6, %7 : vector<8x1xf32>
    %9 = tpu.reciprocal %8 : vector<8x1xf32> -> vector<8x1xf32>
    %c0_3 = arith.constant 0 : index
    %c0_4 = arith.constant 0 : index
    %10 = vector.load %arg2[%c0_3, %c0_4] : memref<1x128xf32, #tpu.memory_space<vmem>>, vector<1x128xf32>
    %11 = vector.broadcast %9 : vector<8x1xf32> to vector<8x128xf32>
    %12 = arith.mulf %0, %11 : vector<8x128xf32>
    %13 = vector.broadcast %10 : vector<1x128xf32> to vector<8x128xf32>
    %14 = arith.mulf %12, %13 : vector<8x128xf32>
    %c0_5 = arith.constant 0 : index
    %c0_6 = arith.constant 0 : index
    %15 = vector.load %arg3[%c0_5, %c0_6] : memref<8x128xf32, #tpu.memory_space<vmem>>, vector<8x128xf32>
    tpu.vector_store %arg3[%c0_5, %c0_6], %14 {strides = array<i32>} : memref<8x128xf32, #tpu.memory_space<vmem>>, vector<8x128xf32>,
    return
  }
  func.func @transform_0(%arg0: i32) -> (i32, i32) {
    %c0_i32 = arith.constant 0 : i32
    %c0_i32_0 = arith.constant 0 : i32
    return %arg0, %c0_i32 : i32, i32
  }
  func.func @transform_1(%arg0: i32) -> (i32, i32) {
    %c0_i32 = arith.constant 0 : i32
    %c0_i32_0 = arith.constant 0 : i32
    %c0_i32_1 = arith.constant 0 : i32
    return %c0_i32, %c0_i32_0 : i32, i32
  }
  func.func @transform_2(%arg0: i32) -> (i32, i32) {
    %c0_i32 = arith.constant 0 : i32
    %c0_i32_0 = arith.constant 0 : i32
    return %arg0, %c0_i32 : i32, i32
  }
}

</mosaic_0001>

<bundles_post_ra>
// kernel: tpu_custom_call.1
= control target key start
LH: loop header
LB: loop body
LE: loop exit
PB: predicated region body
PF: predicated region fallthrough
CT: control target
= control target key end

     0   :  { %7 = vsyncpa [#allocation3], 0  ;;  %s609_s0 = inlined_call_operand.hbm [shape: f32[16,128], index: 0, kind: input, shape index: {}]   ;;  %s610_s1 = inlined_call_operand.vmem [shape: f32[1,128], index: 1, kind: input, shape index: {}]   ;;  %s611_s2 = inlined_call_operand.hbm [shape: f32[16,128], index: 2, kind: output, shape index: {}]  }
   0x1   :  { %9 = vsyncpa [#allocation3 + $0x1], 0 }
   0x2   :  { %10 = vsyncpa [#allocation4], 0 }
   0x3   :  { %12 = vsyncpa [#allocation4 + $0x1], 0  ;;  %s445_s9 = smov 0   ;;  %s447_s10 = smov 0  }
   0x4   :  { %s449_s11 = smov 0   ;;  %s451_s12 = smov 0  }
   0x5 LB: > { %s466_s13 = sadd.s32 4294967295, %s426_s12   ;;  %s267_s14 = sadd.s32 4294967294, %s426_s12   ;;  %s426_s12 = sphi %s451_s12, %s626_s12   ;;  %s422_s11 = sphi %s449_s11, %s625_s11   ;;  %s418_s10 = sphi %s447_s10, %s624_s10   ;;  %s414_s9 = sphi %s445_s9, %s623_s9  }
   0x6   : > { %s470_s15 = sadd.s32 1, %s426_s12   ;;  %s25_s16 = sadd.s32 1, %s422_s11 }
   0x7   : > { %s22_s17 = ssub.s32 %s426_s12, %s470_s15  ;;  %p32_p0 = scmp.ne.s32.totalorder %s422_s11, %s418_s10 }
   0x8   : > { %p23_p1 = scmp.eq.s32.totalorder %s22_s17, 0  ;;  %p33_p2 = scmp.eq.s32.totalorder %s426_s12, 0 }
   0x9   : > { %p38_p3 = scmp.ne.s32.totalorder %s418_s10, %s414_s9  ;;  %p39_p4 = scmp.eq.s32.totalorder %s466_s13, 0 }
   0xa   : > { %s482_s18 = scalar_select %p23_p1, %s422_s11, %s25_s16  }
   0xb   : > { %p484_p5 = por %p33_p2, %p32_p0  ;;  %p488_p6 = por %p39_p4, %p38_p3 }
   0xc   : > { %p83_p7 = scmp.eq.s32.totalorder %s466_s13, 1  ;;  %p89_p8 = scmp.eq.s32.totalorder %s267_s14, 1 }
   0xd   : > { %p292_p10 = scmp.lt.s32.totalorder %s426_s12, 2  ;;  %s112_s23 = sand.u32 1, %s422_s11  }
   0xe   : > { %p495_p11 = por %p83_p7, %p32_p0  ;;  %p499_p12 = por %p89_p8, %p38_p3 }
   0xf   : > { %s271_s24 = sshll.u32 %s426_s12, 7  ;;  %s270_s25 = sshll.u32 %s112_s23, 3 }
  0x10   : > { %s615_s21 = scalar_select %p495_p11, 1, 0 }
  0x11   : > { %s616_s22 = scalar_select %p499_p12, 1, 0 }
  0x12   : > { %s508_s28 = scalar_lea.hbm %s609_s0, %s271_s24  ;;  %s116_s29 = scalar_lea.vmem [#allocation2], %s270_s25 }
  0x13   : > { %s123_s30 = sshll.u32 %s116_s29, 4  ;;  %p512_p13 = pnand %p292_p10, %p484_p5  ;;  %s516_s30 = int_to_ptr.vmem [resolvable:$true] %s123_s30 }
  0x14   : > { %s113_s4 = scalar_lea.sflag [#allocation3], %s112_s23  ;;  %s330_s5 = scalar_lea.hbm %s508_s28, 128 }
  0x15   : > { %p331_p2 = scmp.ne.s32.totalorder %s508_s28, %s330_s5  ;;  %p332_p3 = pneg %p512_p13 }
  0x16   : > { %s335_s8 = scalar_lea.hbm %s609_s0, 256  ;;  %p336_p5 = scmp.lt.u32.totalorder %s508_s28, %s609_s0 }
  0x17   : > { %p333_p4 = pnand %p332_p3, %p331_p2  ;;  %p337_p8 = scmp.lt.u32.totalorder %s335_s8, %s330_s5 }
  0x18   : > { %p339_p9 = scmp.lt.u32.totalorder %s330_s5, %s508_s28 }
  0x19   : > { %p334_p7 = pneg %p333_p4  ;;  %p338_p10 = por %p337_p8, %p336_p5 }
  0x1b   : > { %p340_p0 = por %p339_p9, %p338_p10 }
  0x1d   : > { %p341_p1 = pnand %p340_p0, %p334_p7 }
  0x1f   : > { %344 = shalt.err (!%p341_p1)
}
  0x20   : > { %s345_s17 = scalar_lea.vmem %s516_s30, 128  ;;  %s428_s19 = smov [#allocation2]  }
  0x21   : > { %p346_p2 = scmp.ne.s32.totalorder %s516_s30, %s345_s17  ;;  %s350_s23 = sshll.u32 %s428_s19, 4  ;;  %s351_s23 = int_to_ptr.vmem [resolvable:$false] %s350_s23 }
  0x22   : > { %s352_s24 = scalar_lea.vmem %s351_s23, 256  ;;  %p353_p11 = scmp.lt.s32.totalorder %s516_s30, %s351_s23 }
  0x23   : > { %p348_p4 = pnand %p346_p2, %p332_p3  ;;  %p354_p5 = scmp.lt.s32.totalorder %s352_s24, %s345_s17 }
  0x25   : > { %p349_p12 = pneg %p348_p4  ;;  %p355_p8 = por %p354_p5, %p353_p11 }
  0x27   : > { %p356_p9 = pnand %p355_p8, %p349_p12 }
  0x29   : > { %359 = shalt.err (!%p356_p9)
}
  0x2a   : > { %287 = dma.hbm_to_vmem [thread:$0]  (!%p512_p13), %s508_s28, 128, %s516_s30, %s113_s4  }
  0x2b   : > { %p618_p0 = scmp.lt.s32.totalorder %s426_s12, 3  ;;  %p619_p1 = scmp.ge.s32.totalorder %s426_s12, 1 }
  0x2d   : > { %p129_p3 = pnand %p619_p1, %p618_p0 }
  0x2e   : > { %s550_s25 = sand.u32 (!%p129_p3), 1, %s418_s10  }
  0x2f   : > { %132 = sbr.rel (%p129_p3) target bundleno = 248 (0xf8), region = 28  ;;  %s273_s26 = sshll.u32 (!%p129_p3), %s550_s25, 3 }
  0x30   : > { %s135_s27 = scalar_lea.sflag (!%p129_p3), [#allocation3], %s550_s25  ;;  %s138_s29 = scalar_lea.vmem (!%p129_p3), [#allocation2], %s273_s26 }
  0x36   : > { %405 = dma.done.wait (%p488_p6), %s135_s27, 128  }
  0x37   : > { %407 = vsyncadd (%p488_p6), %s135_s27, 4294967168  ;;  %v159_v0 = vld [vmem:[%s138_s29] sm:$0xff]  ;;  %s277_s30 = sshll.u32 %s466_s13, 7  ;;  %s158_s3 = scalar_lea.vmem [#allocation5], %s273_s26 }
  0x38   : > { %v160_v1 = vmul.f32 %v159_v0, %v159_v0  ;;  %v275_v11 = vld [vmem:[%s610_s1] ss:$0 sm:$0xff]  ;;  %s197_s4 = sshll.u32 %s158_s3, 4  ;;  %s565_s7 = scalar_lea.hbm %s611_s2, %s277_s30  ;;  %s567_s4 = int_to_ptr.vmem [resolvable:$true] %s197_s4 }
  0x39   : > { %s184_s8 = scalar_lea.sflag [#allocation4], %s550_s25  ;;  %s360_s14 = scalar_lea.vmem %s567_s4, 128 }
  0x3a   : > { %161 = vadd.xlane.f32.xlu0 %v160_v1  ;;  %p361_p6 = scmp.ne.s32.totalorder %s567_s4, %s360_s14  ;;  %p620_p11 = scmp.ne.s32.totalorder %s615_s21, 0 }
  0x3b   : > { %s429_s13 = smov [#allocation5]  }
  0x3c   : > { %p362_p12 = pnand %p361_p6, %p620_p11  ;;  %s364_s16 = sshll.u32 %s429_s13, 4  ;;  %s365_s16 = int_to_ptr.vmem [resolvable:$false] %s364_s16 }
  0x3d   : > { %s366_s17 = scalar_lea.vmem %s365_s16, 256  ;;  %p367_p7 = scmp.lt.s32.totalorder %s567_s4, %s365_s16 }
  0x3e   : > { %p363_p13 = pneg %p362_p12  ;;  %p368_p10 = scmp.lt.s32.totalorder %s366_s17, %s360_s14 }
  0x40   : > { %p369_p2 = por %p368_p10, %p367_p7 }
  0x42   : > { %p370_p4 = pnand %p369_p2, %p363_p13 }
  0xc7   : > { %v162_v2 = vpop.xlane.xlu0 %161 }
  0xc8   : > { %v163_v3 = vmul.f32 0.0078125, %v162_v2 }
  0xca   : > { %326 = vrsqrt.f32 %v163_v3  ;;  %vm166_vm0 = vcmp.eq.f32.partialorder %v163_v3, inf  ;;  %v169_v6 = vand.u32 2147483648, %v163_v3  ;;  %vm168_vm1 = vcmp.eq.f32.partialorder %v163_v3, 0.0 }
  0xd4   : > { %v327_v4 = vpop.eup %326 }
  0xd5   : > { %v165_v5 = vmul.f32 %v327_v4, %v163_v3 }
  0xd7   : > { %v167_v7 = vsel %vm166_vm0, %v163_v3, %v165_v5 }
  0xd8   : > { %v170_v8 = vsel %vm168_vm1, %v169_v6, %v167_v7 }
  0xd9   : > { %v171_v9 = vadd.f32 1e-06, %v170_v8 }
  0xdb   : > { %328 = vrcp.f32 %v171_v9 }
  0xe5   : > { %v329_v10 = vpop.eup %328 }
  0xe6   : > { %v174_v12 = vmul.f32 %v329_v10, %v159_v0 }
  0xe8   : > { %v181_v13 = vmul.f32 %v275_v11, %v174_v12 }
  0xea   : > { %182 = vst [vmem:[%s158_s3] sm:$0xff] %v181_v13 }
  0xeb   : > { %373 = shalt.err (!%p370_p4)
}
  0xec   : > { %s374_s19 = scalar_lea.hbm %s565_s7, 128  ;;  %s378_s25 = scalar_lea.hbm %s611_s2, 256 }
  0xed   : > { %p375_p5 = scmp.ne.s32.totalorder %s565_s7, %s374_s19  ;;  %p379_p0 = scmp.lt.u32.totalorder %s565_s7, %s611_s2 }
  0xee   : > { %p380_p1 = scmp.lt.u32.totalorder %s378_s25, %s374_s19  ;;  %p382_p6 = scmp.lt.u32.totalorder %s374_s19, %s565_s7 }
  0xef   : > { %p376_p8 = pnand %p375_p5, %p620_p11 }
  0xf0   : > { %p381_p3 = por %p380_p1, %p379_p0 }
  0xf1   : > { %p377_p9 = pneg %p376_p8 }
  0xf2   : > { %p383_p12 = por %p382_p6, %p381_p3 }
  0xf4   : > { %p384_p13 = pnand %p383_p12, %p377_p9 }
  0xf6   : > { %387 = shalt.err (!%p384_p13)
}
  0xf7   : > { %282 = dma.vmem_to_hbm [thread:$0]  (%p620_p11), %s567_s4, 128, %s565_s7, %s184_s8  }
  0xf8 PF: > { %s209_s29 = sand.u32 1, %s414_s9   ;;  %p621_p7 = scmp.ne.s32.totalorder %s616_s22, 0 }
  0xf9   : > { %p622_p10 = scmp.ge.s32.totalorder %s426_s12, 2  ;;  %s210_s20 = scalar_lea.sflag [#allocation4], %s209_s29 }
  0xfb   : > { %p289_p2 = pnand %p622_p10, %p621_p7 }
  0xfd   : > { %409 = dma.done.wait (!%p289_p2), %s210_s20, 128  }
  0xfe   : > { %411 = vsyncadd (!%p289_p2), %s210_s20, 4294967168  ;;  %p15_p4 = scmp.ge.s32.totalorder %s470_s15, 4   ;;  %s623_s9 = smov %s418_s10 }
  0xff   : > { %s624_s10 = smov %s422_s11  ;;  %s625_s11 = smov %s482_s18 }
 0x100   : > { %s626_s12 = smov %s470_s15  ;;  %17 = sbr.rel (!%p15_p4) target bundleno = 5 (0x5), region = 73 }
 0x107   :  { %215 = vsyncpa [#allocation3], 1 }
 0x108   :  { %217 = vsyncpa [#allocation3 + $0x1], 1 }
 0x109   :  { %218 = vsyncpa [#allocation4], 1 }
 0x10a   :  { %220 = vsyncpa [#allocation4 + $0x1], 1 }

</bundles_post_ra>
